<compile_context>
chip_gen: v5e
topology: v5e:2x2
jax: 0.10.0
libtpu: 0.0.40
codegen_flags: <defaults>
</compile_context>

<pallas_src>
import functools

import jax
import jax.numpy as jnp
import numpy as np
from jax import lax
from jax.experimental import pallas as pl
from jax.experimental.pallas import tpu as pltpu

BINS = 10
ALPHA = 0.75          # only used by the EMA (not active on the first call)
NUM_CLASSES = 2

_LANES = 128
_SUBLANES = 8
_NSPLIT = 2           # leading "parallel" grid axis; 2 TensorCores on v7x


def _ceil_to(v, m):
    return ((v + m - 1) // m) * m


def _cdiv(a, b):
    return (a + b - 1) // b


def _ghm_kernel(x_ref, y_ref, cnt_ref, bsum_ref, *, bins, n_chunks, unroll):
    # x_ref:    (tile_r, 128) f32 logits, classes interleaved along lanes, pad=0
    # y_ref:    (tile_r, 128) f32 one-hot targets (0/1), pad=-1
    # cnt_ref:  (1, bins, 8, 128) f32 output — per-bin element-count partials
    # bsum_ref: (1, bins, 8, 128) f32 output — per-bin bce-sum partials
    # Both outputs are resident accumulators across the "arbitrary" grid axis.

    @pl.when(pl.program_id(1) == 0)
    def _init():
        cnt_ref[...] = jnp.zeros_like(cnt_ref)
        bsum_ref[...] = jnp.zeros_like(bsum_ref)

    scale = jnp.float32(bins - 0.0001)

    def body(ci, carry):
        cnts, bsums = carry
        r = pl.multiple_of(ci * _SUBLANES, _SUBLANES)
        x = x_ref[pl.ds(r, _SUBLANES), :]          # one vreg of logits
        y = y_ref[pl.ds(r, _SUBLANES), :]          # one vreg of targets
        p = 1.0 / (1.0 + jnp.exp(-x))              # sigmoid
        g = jnp.abs(p - y)                         # |dL/dx| (GHM-C); pad -> 1.5
        binned = jnp.floor(g * scale)              # pad -> >= bins (no bin hit)
        # bce_with_logits = max(x,0) - x*y + log1p(exp(-|x|))
        #                 = max(x,0) - x*y - log(max(p, 1-p))   (reuses p)
        bce = jnp.maximum(x, 0.0) - x * y - jnp.log(jnp.maximum(p, 1.0 - p))
        new_c = []
        new_b = []
        for i in range(bins):                      # all bins while data is live
            m = binned == jnp.float32(i)
            new_c.append(cnts[i] + jnp.where(m, 1.0, 0.0))
            new_b.append(bsums[i] + jnp.where(m, bce, 0.0))
        return tuple(new_c), tuple(new_b)

    zeros = tuple(jnp.zeros((_SUBLANES, _LANES), jnp.float32)
                  for _ in range(bins))
    cnts, bsums = lax.fori_loop(0, n_chunks, body, (zeros, zeros),
                                unroll=unroll)

    # Full (8,128) unmasked RMWs, once per tile (not per chunk).
    for i in range(bins):
        cnt_ref[0, i] = cnt_ref[0, i] + cnts[i]
        bsum_ref[0, i] = bsum_ref[0, i] + bsums[i]


@functools.partial(jax.jit, static_argnames=("bins", "max_tile_rows"))
def ghm_loss(x, target, bins=BINS, max_tile_rows=2048):
    """x: (batch, num_classes) float32 logits, target: (batch,) int labels."""
    batch, num_classes = x.shape
    x = x.astype(jnp.float32)
    t = target.reshape(-1).astype(jnp.int32)
    n_elems = batch * num_classes

    # One-hot target, flattened row-major so classes interleave with x's lanes.
    onehot = (t[:, None] == jnp.arange(num_classes, dtype=jnp.int32)[None, :])
    onehot = onehot.astype(jnp.float32)

    # Lane-dense slab geometry: rows % 8 == 0, rows = NSPLIT * steps * tile_r.
    rows0 = max(_SUBLANES, _ceil_to(_cdiv(n_elems, _LANES), _SUBLANES))
    per_core = _cdiv(rows0, _NSPLIT)
    steps = _cdiv(per_core, max_tile_rows)         # grid steps per core
    tile_r = _ceil_to(_cdiv(per_core, steps), _SUBLANES)
    rows = _NSPLIT * steps * tile_r
    pad = rows * _LANES - n_elems

    # Contiguous pad + reshape only — no transpose relayout.
    xs = jnp.pad(x.reshape(-1), (0, pad)).reshape(rows, _LANES)
    ys = jnp.pad(onehot.reshape(-1), (0, pad),
                 constant_values=-1.0).reshape(rows, _LANES)

    n_chunks = tile_r // _SUBLANES
    unroll = next(u for u in (8, 4, 2, 1) if n_chunks % u == 0)
    spc = steps                                    # steps per core

    kernel = functools.partial(_ghm_kernel, bins=bins, n_chunks=n_chunks,
                               unroll=unroll)
    part_shape = (_NSPLIT, bins, _SUBLANES, _LANES)
    cnt, bsum = pl.pallas_call(
        kernel,
        out_shape=(jax.ShapeDtypeStruct(part_shape, jnp.float32),
                   jax.ShapeDtypeStruct(part_shape, jnp.float32)),
        grid_spec=pltpu.PrefetchScalarGridSpec(
            num_scalar_prefetch=0,
            grid=(_NSPLIT, steps),
            in_specs=[
                pl.BlockSpec((tile_r, _LANES), lambda c, i: (c * spc + i, 0)),
                pl.BlockSpec((tile_r, _LANES), lambda c, i: (c * spc + i, 0)),
            ],
            out_specs=[
                pl.BlockSpec((1, bins, _SUBLANES, _LANES),
                             lambda c, i: (c, 0, 0, 0)),
                pl.BlockSpec((1, bins, _SUBLANES, _LANES),
                             lambda c, i: (c, 0, 0, 0)),
            ],
        ),
        compiler_params=pltpu.CompilerParams(
            dimension_semantics=("parallel", "arbitrary")),
    )(xs, ys)

    # O(bins) epilogue in plain JAX (enables the parallel core split above).
    counts_i = jnp.sum(cnt.astype(jnp.int32), axis=(0, 2, 3))    # exact ints
    counts = counts_i.astype(jnp.float32)                        # (bins,)
    bsums = jnp.sum(bsum, axis=(0, 2, 3))                        # (bins,)
    n = jnp.float32(n_elems)
    nonempty = jnp.sum((counts_i > 0).astype(jnp.float32))
    gd = jnp.maximum(counts * nonempty, 0.0001)
    beta = n / gd
    return jnp.sum(beta * bsums) / n               # mean(weight * bce)


def _ghm_loss_ref(x, target, bins=BINS, num_classes=NUM_CLASSES):
    """Plain-numpy reference mirroring the PyTorch forward (first call)."""
    x = np.asarray(x, dtype=np.float32)
    t = np.asarray(target).reshape(-1)
    batch = t.shape[0]
    y = np.zeros((batch, num_classes), dtype=np.float32)
    y[np.arange(batch), t] = 1.0
    g = np.abs(1.0 / (1.0 + np.exp(-x)) - y)
    bin_idx = np.floor(g * (bins - 0.0001)).astype(np.int64)
    bin_count = np.array([(bin_idx == i).sum() for i in range(bins)], np.float32)
    N = x.shape[0] * x.shape[1]
    nonempty = float((bin_count > 0).sum())
    gd = np.clip(bin_count * nonempty, 0.0001, None)
    beta = N / gd
    w = beta[bin_idx]
    bce = np.maximum(x, 0.0) - x * y + np.log1p(np.exp(-np.abs(x)))
    return float(np.mean(w * bce))


if __name__ == "__main__":
    key = jax.random.PRNGKey(0)
    kx, kt = jax.random.split(key)

    # Small shape consistent with the module (batch=32, num_classes=2).
    batch = 32
    x = jax.random.normal(kx, (batch, NUM_CLASSES), dtype=jnp.float32)
    target = jax.random.randint(kt, (batch,), 0, NUM_CLASSES, dtype=jnp.int32)
    loss = jax.block_until_ready(ghm_loss(x, target))
    ref = _ghm_loss_ref(np.array(x), np.array(target))
    np.testing.assert_allclose(float(loss), ref, rtol=1e-4, atol=1e-5)

    # Multi-grid-step + dual-core-split accumulator path (tiny tiles).  Looser
    # rtol only covers f32 bin-boundary rounding vs the numpy reference.
    kx2, kt2 = jax.random.split(kt)
    batch2 = 5000
    x2 = jax.random.normal(kx2, (batch2, NUM_CLASSES), dtype=jnp.float32)
    t2 = jax.random.randint(kt2, (batch2,), 0, NUM_CLASSES, dtype=jnp.int32)
    loss2 = jax.block_until_ready(ghm_loss(x2, t2, max_tile_rows=8))
    ref2 = _ghm_loss_ref(np.array(x2), np.array(t2))
    np.testing.assert_allclose(float(loss2), ref2, rtol=1e-3, atol=1e-5)

    # Default tiling exercising the unrolled in-kernel chunk loop (n_chunks>1).
    kx3, kt3 = jax.random.split(kt2)
    batch3 = 16384
    x3 = jax.random.normal(kx3, (batch3, NUM_CLASSES), dtype=jnp.float32)
    t3 = jax.random.randint(kt3, (batch3,), 0, NUM_CLASSES, dtype=jnp.int32)
    loss3 = jax.block_until_ready(ghm_loss(x3, t3))
    ref3 = _ghm_loss_ref(np.array(x3), np.array(t3))
    np.testing.assert_allclose(float(loss3), ref3, rtol=1e-3, atol=1e-5)

    print("KERNEL_OK")
</pallas_src>

<mosaic_0001>
module attributes {stable_mosaic.version = 11 : i64} {
  func.func @_ghm_kernel(%arg0: i32, %arg1: i32, %arg2: memref<8x128xf32, #tpu.memory_space<vmem>>, %arg3: memref<8x128xf32, #tpu.memory_space<vmem>>, %arg4: memref<1x10x8x128xf32, #tpu.memory_space<vmem>>, %arg5: memref<1x10x8x128xf32, #tpu.memory_space<vmem>>) attributes {dimension_semantics = [#tpu.dimension_semantics<parallel>, #tpu.dimension_semantics<arbitrary>], iteration_bounds = array<i64: 2, 1>, scalar_prefetch = 0 : i64, scratch_operands = 0 : i64, tpu.core_type = #tpu.core_type<tc>, window_params = [{transform_indices = @transform_0, window_bounds = array<i64: 8, 128>}, {transform_indices = @transform_1, window_bounds = array<i64: 8, 128>}, {transform_indices = @transform_2, window_bounds = array<i64: 1, 10, 8, 128>}, {transform_indices = @transform_3, window_bounds = array<i64: 1, 10, 8, 128>}]} {
    %c0_i32 = arith.constant 0 : i32
    %0 = arith.cmpi eq, %arg1, %c0_i32 : i32
    %1 = arith.extui %0 : i1 to i32
    %c0_i32_0 = arith.constant 0 : i32
    %2 = arith.cmpi ne, %1, %c0_i32_0 : i32
    scf.if %2 {
      %cst_209 = arith.constant 0.000000e+00 : f32
      %250 = vector.broadcast %cst_209 : f32 to vector<1x10x8x128xf32>
      %c0_210 = arith.constant 0 : index
      %c0_211 = arith.constant 0 : index
      %c0_212 = arith.constant 0 : index
      %c0_213 = arith.constant 0 : index
      %251 = vector.load %arg4[%c0_210, %c0_211, %c0_212, %c0_213] : memref<1x10x8x128xf32, #tpu.memory_space<vmem>>, vector<1x10x8x128xf32>
      tpu.vector_store %arg4[%c0_210, %c0_211, %c0_212, %c0_213], %250 {strides = array<i32>} : memref<1x10x8x128xf32, #tpu.memory_space<vmem>>, vector<1x10x8x128xf32>,
      %cst_214 = arith.constant 0.000000e+00 : f32
      %252 = vector.broadcast %cst_214 : f32 to vector<1x10x8x128xf32>
      %c0_215 = arith.constant 0 : index
      %c0_216 = arith.constant 0 : index
      %c0_217 = arith.constant 0 : index
      %c0_218 = arith.constant 0 : index
      %253 = vector.load %arg5[%c0_215, %c0_216, %c0_217, %c0_218] : memref<1x10x8x128xf32, #tpu.memory_space<vmem>>, vector<1x10x8x128xf32>
      tpu.vector_store %arg5[%c0_215, %c0_216, %c0_217, %c0_218], %252 {strides = array<i32>} : memref<1x10x8x128xf32, #tpu.memory_space<vmem>>, vector<1x10x8x128xf32>,
    } else {
    }
    %cst = arith.constant 0.000000e+00 : f32
    %3 = vector.broadcast %cst : f32 to vector<8x128xf32>
    %cst_1 = arith.constant 0.000000e+00 : f32
    %4 = vector.broadcast %cst_1 : f32 to vector<8x128xf32>
    %cst_2 = arith.constant 0.000000e+00 : f32
    %5 = vector.broadcast %cst_2 : f32 to vector<8x128xf32>
    %cst_3 = arith.constant 0.000000e+00 : f32
    %6 = vector.broadcast %cst_3 : f32 to vector<8x128xf32>
    %cst_4 = arith.constant 0.000000e+00 : f32
    %7 = vector.broadcast %cst_4 : f32 to vector<8x128xf32>
    %cst_5 = arith.constant 0.000000e+00 : f32
    %8 = vector.broadcast %cst_5 : f32 to vector<8x128xf32>
    %cst_6 = arith.constant 0.000000e+00 : f32
    %9 = vector.broadcast %cst_6 : f32 to vector<8x128xf32>
    %cst_7 = arith.constant 0.000000e+00 : f32
    %10 = vector.broadcast %cst_7 : f32 to vector<8x128xf32>
    %cst_8 = arith.constant 0.000000e+00 : f32
    %11 = vector.broadcast %cst_8 : f32 to vector<8x128xf32>
    %cst_9 = arith.constant 0.000000e+00 : f32
    %12 = vector.broadcast %cst_9 : f32 to vector<8x128xf32>
    %cst_10 = arith.constant 9.99989986 : f32
    %c0_i32_11 = arith.constant 0 : i32
    %c8_i32 = arith.constant 8 : i32
    %13 = arith.muli %c0_i32_11, %c8_i32 : i32
    %14 = tpu.assume_multiple %13, 8 : i32
    %15 = arith.index_cast %14 : i32 to index
    %c0 = arith.constant 0 : index
    %16 = vector.load %arg2[%15, %c0] : memref<8x128xf32, #tpu.memory_space<vmem>>, vector<8x128xf32>
    %17 = arith.index_cast %14 : i32 to index
    %c0_12 = arith.constant 0 : index
    %18 = vector.load %arg3[%17, %c0_12] : memref<8x128xf32, #tpu.memory_space<vmem>>, vector<8x128xf32>
    %cst_13 = arith.constant 0.000000e+00 : f32
    %19 = vector.broadcast %cst_13 : f32 to vector<8x128xf32>
    %20 = arith.subf %19, %16 : vector<8x128xf32>
    %21 = math.exp %20 : vector<8x128xf32>
    %cst_14 = arith.constant 1.000000e+00 : f32
    %22 = vector.broadcast %cst_14 : f32 to vector<8x128xf32>
    %23 = arith.addf %22, %21 : vector<8x128xf32>
    %cst_15 = arith.constant 1.000000e+00 : f32
    %24 = vector.broadcast %cst_15 : f32 to vector<8x128xf32>
    %25 = arith.divf %24, %23 : vector<8x128xf32>
    %26 = arith.subf %25, %18 : vector<8x128xf32>
    %27 = math.absf %26 : vector<8x128xf32>
    %28 = vector.broadcast %cst_10 : f32 to vector<8x128xf32>
    %29 = arith.mulf %27, %28 : vector<8x128xf32>
    %30 = math.floor %29 : vector<8x128xf32>
    %cst_16 = arith.constant 0.000000e+00 : f32
    %31 = vector.broadcast %cst_16 : f32 to vector<8x128xf32>
    %32 = arith.maximumf %16, %31 : vector<8x128xf32>
    %33 = arith.mulf %16, %18 : vector<8x128xf32>
    %34 = arith.subf %32, %33 : vector<8x128xf32>
    %cst_17 = arith.constant 1.000000e+00 : f32
    %35 = vector.broadcast %cst_17 : f32 to vector<8x128xf32>
    %36 = arith.subf %35, %25 : vector<8x128xf32>
    %37 = arith.maximumf %25, %36 : vector<8x128xf32>
    %38 = math.log %37 : vector<8x128xf32>
    %39 = arith.subf %34, %38 : vector<8x128xf32>
    %cst_18 = arith.constant 0.000000e+00 : f32
    %40 = vector.broadcast %cst_18 : f32 to vector<8x128xf32>
    %41 = arith.cmpf oeq, %30, %40 : vector<8x128xf32>
    %cst_19 = arith.constant 1.000000e+00 : f32
    %cst_20 = arith.constant 0.000000e+00 : f32
    %42 = vector.broadcast %cst_19 : f32 to vector<8x128xf32>
    %43 = vector.broadcast %cst_20 : f32 to vector<8x128xf32>
    %44 = arith.select %41, %42, %43 : vector<8x128xi1>, vector<8x128xf32>
    %45 = arith.addf %3, %44 : vector<8x128xf32>
    %cst_21 = arith.constant 0.000000e+00 : f32
    %46 = vector.broadcast %cst_21 : f32 to vector<8x128xf32>
    %47 = arith.select %41, %39, %46 : vector<8x128xi1>, vector<8x128xf32>
    %48 = arith.addf %3, %47 : vector<8x128xf32>
    %cst_22 = arith.constant 1.000000e+00 : f32
    %49 = vector.broadcast %cst_22 : f32 to vector<8x128xf32>
    %50 = arith.cmpf oeq, %30, %49 : vector<8x128xf32>
    %cst_23 = arith.constant 1.000000e+00 : f32
    %cst_24 = arith.constant 0.000000e+00 : f32
    %51 = vector.broadcast %cst_23 : f32 to vector<8x128xf32>
    %52 = vector.broadcast %cst_24 : f32 to vector<8x128xf32>
    %53 = arith.select %50, %51, %52 : vector<8x128xi1>, vector<8x128xf32>
    %54 = arith.addf %4, %53 : vector<8x128xf32>
    %cst_25 = arith.constant 0.000000e+00 : f32
    %55 = vector.broadcast %cst_25 : f32 to vector<8x128xf32>
    %56 = arith.select %50, %39, %55 : vector<8x128xi1>, vector<8x128xf32>
    %57 = arith.addf %4, %56 : vector<8x128xf32>
    %cst_26 = arith.constant 2.000000e+00 : f32
    %58 = vector.broadcast %cst_26 : f32 to vector<8x128xf32>
    %59 = arith.cmpf oeq, %30, %58 : vector<8x128xf32>
    %cst_27 = arith.constant 1.000000e+00 : f32
    %cst_28 = arith.constant 0.000000e+00 : f32
    %60 = vector.broadcast %cst_27 : f32 to vector<8x128xf32>
    %61 = vector.broadcast %cst_28 : f32 to vector<8x128xf32>
    %62 = arith.select %59, %60, %61 : vector<8x128xi1>, vector<8x128xf32>
    %63 = arith.addf %5, %62 : vector<8x128xf32>
    %cst_29 = arith.constant 0.000000e+00 : f32
    %64 = vector.broadcast %cst_29 : f32 to vector<8x128xf32>
    %65 = arith.select %59, %39, %64 : vector<8x128xi1>, vector<8x128xf32>
    %66 = arith.addf %5, %65 : vector<8x128xf32>
    %cst_30 = arith.constant 3.000000e+00 : f32
    %67 = vector.broadcast %cst_30 : f32 to vector<8x128xf32>
    %68 = arith.cmpf oeq, %30, %67 : vector<8x128xf32>
    %cst_31 = arith.constant 1.000000e+00 : f32
    %cst_32 = arith.constant 0.000000e+00 : f32
    %69 = vector.broadcast %cst_31 : f32 to vector<8x128xf32>
    %70 = vector.broadcast %cst_32 : f32 to vector<8x128xf32>
    %71 = arith.select %68, %69, %70 : vector<8x128xi1>, vector<8x128xf32>
    %72 = arith.addf %6, %71 : vector<8x128xf32>
    %cst_33 = arith.constant 0.000000e+00 : f32
    %73 = vector.broadcast %cst_33 : f32 to vector<8x128xf32>
    %74 = arith.select %68, %39, %73 : vector<8x128xi1>, vector<8x128xf32>
    %75 = arith.addf %6, %74 : vector<8x128xf32>
    %cst_34 = arith.constant 4.000000e+00 : f32
    %76 = vector.broadcast %cst_34 : f32 to vector<8x128xf32>
    %77 = arith.cmpf oeq, %30, %76 : vector<8x128xf32>
    %cst_35 = arith.constant 1.000000e+00 : f32
    %cst_36 = arith.constant 0.000000e+00 : f32
    %78 = vector.broadcast %cst_35 : f32 to vector<8x128xf32>
    %79 = vector.broadcast %cst_36 : f32 to vector<8x128xf32>
    %80 = arith.select %77, %78, %79 : vector<8x128xi1>, vector<8x128xf32>
    %81 = arith.addf %7, %80 : vector<8x128xf32>
    %cst_37 = arith.constant 0.000000e+00 : f32
    %82 = vector.broadcast %cst_37 : f32 to vector<8x128xf32>
    %83 = arith.select %77, %39, %82 : vector<8x128xi1>, vector<8x128xf32>
    %84 = arith.addf %7, %83 : vector<8x128xf32>
    %cst_38 = arith.constant 5.000000e+00 : f32
    %85 = vector.broadcast %cst_38 : f32 to vector<8x128xf32>
    %86 = arith.cmpf oeq, %30, %85 : vector<8x128xf32>
    %cst_39 = arith.constant 1.000000e+00 : f32
    %cst_40 = arith.constant 0.000000e+00 : f32
    %87 = vector.broadcast %cst_39 : f32 to vector<8x128xf32>
    %88 = vector.broadcast %cst_40 : f32 to vector<8x128xf32>
    %89 = arith.select %86, %87, %88 : vector<8x128xi1>, vector<8x128xf32>
    %90 = arith.addf %8, %89 : vector<8x128xf32>
    %cst_41 = arith.constant 0.000000e+00 : f32
    %91 = vector.broadcast %cst_41 : f32 to vector<8x128xf32>
    %92 = arith.select %86, %39, %91 : vector<8x128xi1>, vector<8x128xf32>
    %93 = arith.addf %8, %92 : vector<8x128xf32>
    %cst_42 = arith.constant 6.000000e+00 : f32
    %94 = vector.broadcast %cst_42 : f32 to vector<8x128xf32>
    %95 = arith.cmpf oeq, %30, %94 : vector<8x128xf32>
    %cst_43 = arith.constant 1.000000e+00 : f32
    %cst_44 = arith.constant 0.000000e+00 : f32
    %96 = vector.broadcast %cst_43 : f32 to vector<8x128xf32>
    %97 = vector.broadcast %cst_44 : f32 to vector<8x128xf32>
    %98 = arith.select %95, %96, %97 : vector<8x128xi1>, vector<8x128xf32>
    %99 = arith.addf %9, %98 : vector<8x128xf32>
    %cst_45 = arith.constant 0.000000e+00 : f32
    %100 = vector.broadcast %cst_45 : f32 to vector<8x128xf32>
    %101 = arith.select %95, %39, %100 : vector<8x128xi1>, vector<8x128xf32>
    %102 = arith.addf %9, %101 : vector<8x128xf32>
    %cst_46 = arith.constant 7.000000e+00 : f32
    %103 = vector.broadcast %cst_46 : f32 to vector<8x128xf32>
    %104 = arith.cmpf oeq, %30, %103 : vector<8x128xf32>
    %cst_47 = arith.constant 1.000000e+00 : f32
    %cst_48 = arith.constant 0.000000e+00 : f32
    %105 = vector.broadcast %cst_47 : f32 to vector<8x128xf32>
    %106 = vector.broadcast %cst_48 : f32 to vector<8x128xf32>
    %107 = arith.select %104, %105, %106 : vector<8x128xi1>, vector<8x128xf32>
    %108 = arith.addf %10, %107 : vector<8x128xf32>
    %cst_49 = arith.constant 0.000000e+00 : f32
    %109 = vector.broadcast %cst_49 : f32 to vector<8x128xf32>
    %110 = arith.select %104, %39, %109 : vector<8x128xi1>, vector<8x128xf32>
    %111 = arith.addf %10, %110 : vector<8x128xf32>
    %cst_50 = arith.constant 8.000000e+00 : f32
    %112 = vector.broadcast %cst_50 : f32 to vector<8x128xf32>
    %113 = arith.cmpf oeq, %30, %112 : vector<8x128xf32>
    %cst_51 = arith.constant 1.000000e+00 : f32
    %cst_52 = arith.constant 0.000000e+00 : f32
    %114 = vector.broadcast %cst_51 : f32 to vector<8x128xf32>
    %115 = vector.broadcast %cst_52 : f32 to vector<8x128xf32>
    %116 = arith.select %113, %114, %115 : vector<8x128xi1>, vector<8x128xf32>
    %117 = arith.addf %11, %116 : vector<8x128xf32>
    %cst_53 = arith.constant 0.000000e+00 : f32
    %118 = vector.broadcast %cst_53 : f32 to vector<8x128xf32>
    %119 = arith.select %113, %39, %118 : vector<8x128xi1>, vector<8x128xf32>
    %120 = arith.addf %11, %119 : vector<8x128xf32>
    %cst_54 = arith.constant 9.000000e+00 : f32
    %121 = vector.broadcast %cst_54 : f32 to vector<8x128xf32>
    %122 = arith.cmpf oeq, %30, %121 : vector<8x128xf32>
    %cst_55 = arith.constant 1.000000e+00 : f32
    %cst_56 = arith.constant 0.000000e+00 : f32
    %123 = vector.broadcast %cst_55 : f32 to vector<8x128xf32>
    %124 = vector.broadcast %cst_56 : f32 to vector<8x128xf32>
    %125 = arith.select %122, %123, %124 : vector<8x128xi1>, vector<8x128xf32>
    %126 = arith.addf %12, %125 : vector<8x128xf32>
    %cst_57 = arith.constant 0.000000e+00 : f32
    %127 = vector.broadcast %cst_57 : f32 to vector<8x128xf32>
    %128 = arith.select %122, %39, %127 : vector<8x128xi1>, vector<8x128xf32>
    %129 = arith.addf %12, %128 : vector<8x128xf32>
    %c1_i32 = arith.constant 1 : i32
    %c0_58 = arith.constant 0 : index
    %c0_59 = arith.constant 0 : index
    %c0_60 = arith.constant 0 : index
    %c0_61 = arith.constant 0 : index
    %130 = vector.load %arg4[%c0_58, %c0_59, %c0_60, %c0_61] : memref<1x10x8x128xf32, #tpu.memory_space<vmem>>, vector<1x1x8x128xf32>
    %131 = vector.shape_cast %130 : vector<1x1x8x128xf32> to vector<8x128xf32>
    %132 = arith.addf %131, %45 : vector<8x128xf32>
    %c0_62 = arith.constant 0 : index
    %c0_63 = arith.constant 0 : index
    %c0_64 = arith.constant 0 : index
    %c0_65 = arith.constant 0 : index
    %133 = vector.load %arg4[%c0_62, %c0_63, %c0_64, %c0_65] : memref<1x10x8x128xf32, #tpu.memory_space<vmem>>, vector<1x1x8x128xf32>
    %134 = vector.shape_cast %133 : vector<1x1x8x128xf32> to vector<8x128xf32>
    %135 = vector.shape_cast %132 : vector<8x128xf32> to vector<1x1x8x128xf32>
    tpu.vector_store %arg4[%c0_62, %c0_63, %c0_64, %c0_65], %135 {strides = array<i32>} : memref<1x10x8x128xf32, #tpu.memory_space<vmem>>, vector<1x1x8x128xf32>,
    %c0_66 = arith.constant 0 : index
    %c0_67 = arith.constant 0 : index
    %c0_68 = arith.constant 0 : index
    %c0_69 = arith.constant 0 : index
    %136 = vector.load %arg5[%c0_66, %c0_67, %c0_68, %c0_69] : memref<1x10x8x128xf32, #tpu.memory_space<vmem>>, vector<1x1x8x128xf32>
    %137 = vector.shape_cast %136 : vector<1x1x8x128xf32> to vector<8x128xf32>
    %138 = arith.addf %137, %48 : vector<8x128xf32>
    %c0_70 = arith.constant 0 : index
    %c0_71 = arith.constant 0 : index
    %c0_72 = arith.constant 0 : index
    %c0_73 = arith.constant 0 : index
    %139 = vector.load %arg5[%c0_70, %c0_71, %c0_72, %c0_73] : memref<1x10x8x128xf32, #tpu.memory_space<vmem>>, vector<1x1x8x128xf32>
    %140 = vector.shape_cast %139 : vector<1x1x8x128xf32> to vector<8x128xf32>
    %141 = vector.shape_cast %138 : vector<8x128xf32> to vector<1x1x8x128xf32>
    tpu.vector_store %arg5[%c0_70, %c0_71, %c0_72, %c0_73], %141 {strides = array<i32>} : memref<1x10x8x128xf32, #tpu.memory_space<vmem>>, vector<1x1x8x128xf32>,
    %c0_74 = arith.constant 0 : index
    %c1 = arith.constant 1 : index
    %c0_75 = arith.constant 0 : index
    %c0_76 = arith.constant 0 : index
    %142 = vector.load %arg4[%c0_74, %c1, %c0_75, %c0_76] : memref<1x10x8x128xf32, #tpu.memory_space<vmem>>, vector<1x1x8x128xf32>
    %143 = vector.shape_cast %142 : vector<1x1x8x128xf32> to vector<8x128xf32>
    %144 = arith.addf %143, %54 : vector<8x128xf32>
    %c0_77 = arith.constant 0 : index
    %c1_78 = arith.constant 1 : index
    %c0_79 = arith.constant 0 : index
    %c0_80 = arith.constant 0 : index
    %145 = vector.load %arg4[%c0_77, %c1_78, %c0_79, %c0_80] : memref<1x10x8x128xf32, #tpu.memory_space<vmem>>, vector<1x1x8x128xf32>
    %146 = vector.shape_cast %145 : vector<1x1x8x128xf32> to vector<8x128xf32>
    %147 = vector.shape_cast %144 : vector<8x128xf32> to vector<1x1x8x128xf32>
    tpu.vector_store %arg4[%c0_77, %c1_78, %c0_79, %c0_80], %147 {strides = array<i32>} : memref<1x10x8x128xf32, #tpu.memory_space<vmem>>, vector<1x1x8x128xf32>,
    %c0_81 = arith.constant 0 : index
    %c1_82 = arith.constant 1 : index
    %c0_83 = arith.constant 0 : index
    %c0_84 = arith.constant 0 : index
    %148 = vector.load %arg5[%c0_81, %c1_82, %c0_83, %c0_84] : memref<1x10x8x128xf32, #tpu.memory_space<vmem>>, vector<1x1x8x128xf32>
    %149 = vector.shape_cast %148 : vector<1x1x8x128xf32> to vector<8x128xf32>
    %150 = arith.addf %149, %57 : vector<8x128xf32>
    %c0_85 = arith.constant 0 : index
    %c1_86 = arith.constant 1 : index
    %c0_87 = arith.constant 0 : index
    %c0_88 = arith.constant 0 : index
    %151 = vector.load %arg5[%c0_85, %c1_86, %c0_87, %c0_88] : memref<1x10x8x128xf32, #tpu.memory_space<vmem>>, vector<1x1x8x128xf32>
    %152 = vector.shape_cast %151 : vector<1x1x8x128xf32> to vector<8x128xf32>
    %153 = vector.shape_cast %150 : vector<8x128xf32> to vector<1x1x8x128xf32>
    tpu.vector_store %arg5[%c0_85, %c1_86, %c0_87, %c0_88], %153 {strides = array<i32>} : memref<1x10x8x128xf32, #tpu.memory_space<vmem>>, vector<1x1x8x128xf32>,
    %c0_89 = arith.constant 0 : index
    %c2 = arith.constant 2 : index
    %c0_90 = arith.constant 0 : index
    %c0_91 = arith.constant 0 : index
    %154 = vector.load %arg4[%c0_89, %c2, %c0_90, %c0_91] : memref<1x10x8x128xf32, #tpu.memory_space<vmem>>, vector<1x1x8x128xf32>
    %155 = vector.shape_cast %154 : vector<1x1x8x128xf32> to vector<8x128xf32>
    %156 = arith.addf %155, %63 : vector<8x128xf32>
    %c0_92 = arith.constant 0 : index
    %c2_93 = arith.constant 2 : index
    %c0_94 = arith.constant 0 : index
    %c0_95 = arith.constant 0 : index
    %157 = vector.load %arg4[%c0_92, %c2_93, %c0_94, %c0_95] : memref<1x10x8x128xf32, #tpu.memory_space<vmem>>, vector<1x1x8x128xf32>
    %158 = vector.shape_cast %157 : vector<1x1x8x128xf32> to vector<8x128xf32>
    %159 = vector.shape_cast %156 : vector<8x128xf32> to vector<1x1x8x128xf32>
    tpu.vector_store %arg4[%c0_92, %c2_93, %c0_94, %c0_95], %159 {strides = array<i32>} : memref<1x10x8x128xf32, #tpu.memory_space<vmem>>, vector<1x1x8x128xf32>,
    %c0_96 = arith.constant 0 : index
    %c2_97 = arith.constant 2 : index
    %c0_98 = arith.constant 0 : index
    %c0_99 = arith.constant 0 : index
    %160 = vector.load %arg5[%c0_96, %c2_97, %c0_98, %c0_99] : memref<1x10x8x128xf32, #tpu.memory_space<vmem>>, vector<1x1x8x128xf32>
    %161 = vector.shape_cast %160 : vector<1x1x8x128xf32> to vector<8x128xf32>
    %162 = arith.addf %161, %66 : vector<8x128xf32>
    %c0_100 = arith.constant 0 : index
    %c2_101 = arith.constant 2 : index
    %c0_102 = arith.constant 0 : index
    %c0_103 = arith.constant 0 : index
    %163 = vector.load %arg5[%c0_100, %c2_101, %c0_102, %c0_103] : memref<1x10x8x128xf32, #tpu.memory_space<vmem>>, vector<1x1x8x128xf32>
    %164 = vector.shape_cast %163 : vector<1x1x8x128xf32> to vector<8x128xf32>
    %165 = vector.shape_cast %162 : vector<8x128xf32> to vector<1x1x8x128xf32>
    tpu.vector_store %arg5[%c0_100, %c2_101, %c0_102, %c0_103], %165 {strides = array<i32>} : memref<1x10x8x128xf32, #tpu.memory_space<vmem>>, vector<1x1x8x128xf32>,
    %c0_104 = arith.constant 0 : index
    %c3 = arith.constant 3 : index
    %c0_105 = arith.constant 0 : index
    %c0_106 = arith.constant 0 : index
    %166 = vector.load %arg4[%c0_104, %c3, %c0_105, %c0_106] : memref<1x10x8x128xf32, #tpu.memory_space<vmem>>, vector<1x1x8x128xf32>
    %167 = vector.shape_cast %166 : vector<1x1x8x128xf32> to vector<8x128xf32>
    %168 = arith.addf %167, %72 : vector<8x128xf32>
    %c0_107 = arith.constant 0 : index
    %c3_108 = arith.constant 3 : index
    %c0_109 = arith.constant 0 : index
    %c0_110 = arith.constant 0 : index
    %169 = vector.load %arg4[%c0_107, %c3_108, %c0_109, %c0_110] : memref<1x10x8x128xf32, #tpu.memory_space<vmem>>, vector<1x1x8x128xf32>
    %170 = vector.shape_cast %169 : vector<1x1x8x128xf32> to vector<8x128xf32>
    %171 = vector.shape_cast %168 : vector<8x128xf32> to vector<1x1x8x128xf32>
    tpu.vector_store %arg4[%c0_107, %c3_108, %c0_109, %c0_110], %171 {strides = array<i32>} : memref<1x10x8x128xf32, #tpu.memory_space<vmem>>, vector<1x1x8x128xf32>,
    %c0_111 = arith.constant 0 : index
    %c3_112 = arith.constant 3 : index
    %c0_113 = arith.constant 0 : index
    %c0_114 = arith.constant 0 : index
    %172 = vector.load %arg5[%c0_111, %c3_112, %c0_113, %c0_114] : memref<1x10x8x128xf32, #tpu.memory_space<vmem>>, vector<1x1x8x128xf32>
    %173 = vector.shape_cast %172 : vector<1x1x8x128xf32> to vector<8x128xf32>
    %174 = arith.addf %173, %75 : vector<8x128xf32>
    %c0_115 = arith.constant 0 : index
    %c3_116 = arith.constant 3 : index
    %c0_117 = arith.constant 0 : index
    %c0_118 = arith.constant 0 : index
    %175 = vector.load %arg5[%c0_115, %c3_116, %c0_117, %c0_118] : memref<1x10x8x128xf32, #tpu.memory_space<vmem>>, vector<1x1x8x128xf32>
    %176 = vector.shape_cast %175 : vector<1x1x8x128xf32> to vector<8x128xf32>
    %177 = vector.shape_cast %174 : vector<8x128xf32> to vector<1x1x8x128xf32>
    tpu.vector_store %arg5[%c0_115, %c3_116, %c0_117, %c0_118], %177 {strides = array<i32>} : memref<1x10x8x128xf32, #tpu.memory_space<vmem>>, vector<1x1x8x128xf32>,
    %c0_119 = arith.constant 0 : index
    %c4 = arith.constant 4 : index
    %c0_120 = arith.constant 0 : index
    %c0_121 = arith.constant 0 : index
    %178 = vector.load %arg4[%c0_119, %c4, %c0_120, %c0_121] : memref<1x10x8x128xf32, #tpu.memory_space<vmem>>, vector<1x1x8x128xf32>
    %179 = vector.shape_cast %178 : vector<1x1x8x128xf32> to vector<8x128xf32>
    %180 = arith.addf %179, %81 : vector<8x128xf32>
    %c0_122 = arith.constant 0 : index
    %c4_123 = arith.constant 4 : index
    %c0_124 = arith.constant 0 : index
    %c0_125 = arith.constant 0 : index
    %181 = vector.load %arg4[%c0_122, %c4_123, %c0_124, %c0_125] : memref<1x10x8x128xf32, #tpu.memory_space<vmem>>, vector<1x1x8x128xf32>
    %182 = vector.shape_cast %181 : vector<1x1x8x128xf32> to vector<8x128xf32>
    %183 = vector.shape_cast %180 : vector<8x128xf32> to vector<1x1x8x128xf32>
    tpu.vector_store %arg4[%c0_122, %c4_123, %c0_124, %c0_125], %183 {strides = array<i32>} : memref<1x10x8x128xf32, #tpu.memory_space<vmem>>, vector<1x1x8x128xf32>,
    %c0_126 = arith.constant 0 : index
    %c4_127 = arith.constant 4 : index
    %c0_128 = arith.constant 0 : index
    %c0_129 = arith.constant 0 : index
    %184 = vector.load %arg5[%c0_126, %c4_127, %c0_128, %c0_129] : memref<1x10x8x128xf32, #tpu.memory_space<vmem>>, vector<1x1x8x128xf32>
    %185 = vector.shape_cast %184 : vector<1x1x8x128xf32> to vector<8x128xf32>
    %186 = arith.addf %185, %84 : vector<8x128xf32>
    %c0_130 = arith.constant 0 : index
    %c4_131 = arith.constant 4 : index
    %c0_132 = arith.constant 0 : index
    %c0_133 = arith.constant 0 : index
    %187 = vector.load %arg5[%c0_130, %c4_131, %c0_132, %c0_133] : memref<1x10x8x128xf32, #tpu.memory_space<vmem>>, vector<1x1x8x128xf32>
    %188 = vector.shape_cast %187 : vector<1x1x8x128xf32> to vector<8x128xf32>
    %189 = vector.shape_cast %186 : vector<8x128xf32> to vector<1x1x8x128xf32>
    tpu.vector_store %arg5[%c0_130, %c4_131, %c0_132, %c0_133], %189 {strides = array<i32>} : memref<1x10x8x128xf32, #tpu.memory_space<vmem>>, vector<1x1x8x128xf32>,
    %c0_134 = arith.constant 0 : index
    %c5 = arith.constant 5 : index
    %c0_135 = arith.constant 0 : index
    %c0_136 = arith.constant 0 : index
    %190 = vector.load %arg4[%c0_134, %c5, %c0_135, %c0_136] : memref<1x10x8x128xf32, #tpu.memory_space<vmem>>, vector<1x1x8x128xf32>
    %191 = vector.shape_cast %190 : vector<1x1x8x128xf32> to vector<8x128xf32>
    %192 = arith.addf %191, %90 : vector<8x128xf32>
    %c0_137 = arith.constant 0 : index
    %c5_138 = arith.constant 5 : index
    %c0_139 = arith.constant 0 : index
    %c0_140 = arith.constant 0 : index
    %193 = vector.load %arg4[%c0_137, %c5_138, %c0_139, %c0_140] : memref<1x10x8x128xf32, #tpu.memory_space<vmem>>, vector<1x1x8x128xf32>
    %194 = vector.shape_cast %193 : vector<1x1x8x128xf32> to vector<8x128xf32>
    %195 = vector.shape_cast %192 : vector<8x128xf32> to vector<1x1x8x128xf32>
    tpu.vector_store %arg4[%c0_137, %c5_138, %c0_139, %c0_140], %195 {strides = array<i32>} : memref<1x10x8x128xf32, #tpu.memory_space<vmem>>, vector<1x1x8x128xf32>,
    %c0_141 = arith.constant 0 : index
    %c5_142 = arith.constant 5 : index
    %c0_143 = arith.constant 0 : index
    %c0_144 = arith.constant 0 : index
    %196 = vector.load %arg5[%c0_141, %c5_142, %c0_143, %c0_144] : memref<1x10x8x128xf32, #tpu.memory_space<vmem>>, vector<1x1x8x128xf32>
    %197 = vector.shape_cast %196 : vector<1x1x8x128xf32> to vector<8x128xf32>
    %198 = arith.addf %197, %93 : vector<8x128xf32>
    %c0_145 = arith.constant 0 : index
    %c5_146 = arith.constant 5 : index
    %c0_147 = arith.constant 0 : index
    %c0_148 = arith.constant 0 : index
    %199 = vector.load %arg5[%c0_145, %c5_146, %c0_147, %c0_148] : memref<1x10x8x128xf32, #tpu.memory_space<vmem>>, vector<1x1x8x128xf32>
    %200 = vector.shape_cast %199 : vector<1x1x8x128xf32> to vector<8x128xf32>
    %201 = vector.shape_cast %198 : vector<8x128xf32> to vector<1x1x8x128xf32>
    tpu.vector_store %arg5[%c0_145, %c5_146, %c0_147, %c0_148], %201 {strides = array<i32>} : memref<1x10x8x128xf32, #tpu.memory_space<vmem>>, vector<1x1x8x128xf32>,
    %c0_149 = arith.constant 0 : index
    %c6 = arith.constant 6 : index
    %c0_150 = arith.constant 0 : index
    %c0_151 = arith.constant 0 : index
    %202 = vector.load %arg4[%c0_149, %c6, %c0_150, %c0_151] : memref<1x10x8x128xf32, #tpu.memory_space<vmem>>, vector<1x1x8x128xf32>
    %203 = vector.shape_cast %202 : vector<1x1x8x128xf32> to vector<8x128xf32>
    %204 = arith.addf %203, %99 : vector<8x128xf32>
    %c0_152 = arith.constant 0 : index
    %c6_153 = arith.constant 6 : index
    %c0_154 = arith.constant 0 : index
    %c0_155 = arith.constant 0 : index
    %205 = vector.load %arg4[%c0_152, %c6_153, %c0_154, %c0_155] : memref<1x10x8x128xf32, #tpu.memory_space<vmem>>, vector<1x1x8x128xf32>
    %206 = vector.shape_cast %205 : vector<1x1x8x128xf32> to vector<8x128xf32>
    %207 = vector.shape_cast %204 : vector<8x128xf32> to vector<1x1x8x128xf32>
    tpu.vector_store %arg4[%c0_152, %c6_153, %c0_154, %c0_155], %207 {strides = array<i32>} : memref<1x10x8x128xf32, #tpu.memory_space<vmem>>, vector<1x1x8x128xf32>,
    %c0_156 = arith.constant 0 : index
    %c6_157 = arith.constant 6 : index
    %c0_158 = arith.constant 0 : index
    %c0_159 = arith.constant 0 : index
    %208 = vector.load %arg5[%c0_156, %c6_157, %c0_158, %c0_159] : memref<1x10x8x128xf32, #tpu.memory_space<vmem>>, vector<1x1x8x128xf32>
    %209 = vector.shape_cast %208 : vector<1x1x8x128xf32> to vector<8x128xf32>
    %210 = arith.addf %209, %102 : vector<8x128xf32>
    %c0_160 = arith.constant 0 : index
    %c6_161 = arith.constant 6 : index
    %c0_162 = arith.constant 0 : index
    %c0_163 = arith.constant 0 : index
    %211 = vector.load %arg5[%c0_160, %c6_161, %c0_162, %c0_163] : memref<1x10x8x128xf32, #tpu.memory_space<vmem>>, vector<1x1x8x128xf32>
    %212 = vector.shape_cast %211 : vector<1x1x8x128xf32> to vector<8x128xf32>
    %213 = vector.shape_cast %210 : vector<8x128xf32> to vector<1x1x8x128xf32>
    tpu.vector_store %arg5[%c0_160, %c6_161, %c0_162, %c0_163], %213 {strides = array<i32>} : memref<1x10x8x128xf32, #tpu.memory_space<vmem>>, vector<1x1x8x128xf32>,
    %c0_164 = arith.constant 0 : index
    %c7 = arith.constant 7 : index
    %c0_165 = arith.constant 0 : index
    %c0_166 = arith.constant 0 : index
    %214 = vector.load %arg4[%c0_164, %c7, %c0_165, %c0_166] : memref<1x10x8x128xf32, #tpu.memory_space<vmem>>, vector<1x1x8x128xf32>
    %215 = vector.shape_cast %214 : vector<1x1x8x128xf32> to vector<8x128xf32>
    %216 = arith.addf %215, %108 : vector<8x128xf32>
    %c0_167 = arith.constant 0 : index
    %c7_168 = arith.constant 7 : index
    %c0_169 = arith.constant 0 : index
    %c0_170 = arith.constant 0 : index
    %217 = vector.load %arg4[%c0_167, %c7_168, %c0_169, %c0_170] : memref<1x10x8x128xf32, #tpu.memory_space<vmem>>, vector<1x1x8x128xf32>
    %218 = vector.shape_cast %217 : vector<1x1x8x128xf32> to vector<8x128xf32>
    %219 = vector.shape_cast %216 : vector<8x128xf32> to vector<1x1x8x128xf32>
    tpu.vector_store %arg4[%c0_167, %c7_168, %c0_169, %c0_170], %219 {strides = array<i32>} : memref<1x10x8x128xf32, #tpu.memory_space<vmem>>, vector<1x1x8x128xf32>,
    %c0_171 = arith.constant 0 : index
    %c7_172 = arith.constant 7 : index
    %c0_173 = arith.constant 0 : index
    %c0_174 = arith.constant 0 : index
    %220 = vector.load %arg5[%c0_171, %c7_172, %c0_173, %c0_174] : memref<1x10x8x128xf32, #tpu.memory_space<vmem>>, vector<1x1x8x128xf32>
    %221 = vector.shape_cast %220 : vector<1x1x8x128xf32> to vector<8x128xf32>
    %222 = arith.addf %221, %111 : vector<8x128xf32>
    %c0_175 = arith.constant 0 : index
    %c7_176 = arith.constant 7 : index
    %c0_177 = arith.constant 0 : index
    %c0_178 = arith.constant 0 : index
    %223 = vector.load %arg5[%c0_175, %c7_176, %c0_177, %c0_178] : memref<1x10x8x128xf32, #tpu.memory_space<vmem>>, vector<1x1x8x128xf32>
    %224 = vector.shape_cast %223 : vector<1x1x8x128xf32> to vector<8x128xf32>
    %225 = vector.shape_cast %222 : vector<8x128xf32> to vector<1x1x8x128xf32>
    tpu.vector_store %arg5[%c0_175, %c7_176, %c0_177, %c0_178], %225 {strides = array<i32>} : memref<1x10x8x128xf32, #tpu.memory_space<vmem>>, vector<1x1x8x128xf32>,
    %c0_179 = arith.constant 0 : index
    %c8 = arith.constant 8 : index
    %c0_180 = arith.constant 0 : index
    %c0_181 = arith.constant 0 : index
    %226 = vector.load %arg4[%c0_179, %c8, %c0_180, %c0_181] : memref<1x10x8x128xf32, #tpu.memory_space<vmem>>, vector<1x1x8x128xf32>
    %227 = vector.shape_cast %226 : vector<1x1x8x128xf32> to vector<8x128xf32>
    %228 = arith.addf %227, %117 : vector<8x128xf32>
    %c0_182 = arith.constant 0 : index
    %c8_183 = arith.constant 8 : index
    %c0_184 = arith.constant 0 : index
    %c0_185 = arith.constant 0 : index
    %229 = vector.load %arg4[%c0_182, %c8_183, %c0_184, %c0_185] : memref<1x10x8x128xf32, #tpu.memory_space<vmem>>, vector<1x1x8x128xf32>
    %230 = vector.shape_cast %229 : vector<1x1x8x128xf32> to vector<8x128xf32>
    %231 = vector.shape_cast %228 : vector<8x128xf32> to vector<1x1x8x128xf32>
    tpu.vector_store %arg4[%c0_182, %c8_183, %c0_184, %c0_185], %231 {strides = array<i32>} : memref<1x10x8x128xf32, #tpu.memory_space<vmem>>, vector<1x1x8x128xf32>,
    %c0_186 = arith.constant 0 : index
    %c8_187 = arith.constant 8 : index
    %c0_188 = arith.constant 0 : index
    %c0_189 = arith.constant 0 : index
    %232 = vector.load %arg5[%c0_186, %c8_187, %c0_188, %c0_189] : memref<1x10x8x128xf32, #tpu.memory_space<vmem>>, vector<1x1x8x128xf32>
    %233 = vector.shape_cast %232 : vector<1x1x8x128xf32> to vector<8x128xf32>
    %234 = arith.addf %233, %120 : vector<8x128xf32>
    %c0_190 = arith.constant 0 : index
    %c8_191 = arith.constant 8 : index
    %c0_192 = arith.constant 0 : index
    %c0_193 = arith.constant 0 : index
    %235 = vector.load %arg5[%c0_190, %c8_191, %c0_192, %c0_193] : memref<1x10x8x128xf32, #tpu.memory_space<vmem>>, vector<1x1x8x128xf32>
    %236 = vector.shape_cast %235 : vector<1x1x8x128xf32> to vector<8x128xf32>
    %237 = vector.shape_cast %234 : vector<8x128xf32> to vector<1x1x8x128xf32>
    tpu.vector_store %arg5[%c0_190, %c8_191, %c0_192, %c0_193], %237 {strides = array<i32>} : memref<1x10x8x128xf32, #tpu.memory_space<vmem>>, vector<1x1x8x128xf32>,
    %c0_194 = arith.constant 0 : index
    %c9 = arith.constant 9 : index
    %c0_195 = arith.constant 0 : index
    %c0_196 = arith.constant 0 : index
    %238 = vector.load %arg4[%c0_194, %c9, %c0_195, %c0_196] : memref<1x10x8x128xf32, #tpu.memory_space<vmem>>, vector<1x1x8x128xf32>
    %239 = vector.shape_cast %238 : vector<1x1x8x128xf32> to vector<8x128xf32>
    %240 = arith.addf %239, %126 : vector<8x128xf32>
    %c0_197 = arith.constant 0 : index
    %c9_198 = arith.constant 9 : index
    %c0_199 = arith.constant 0 : index
    %c0_200 = arith.constant 0 : index
    %241 = vector.load %arg4[%c0_197, %c9_198, %c0_199, %c0_200] : memref<1x10x8x128xf32, #tpu.memory_space<vmem>>, vector<1x1x8x128xf32>
    %242 = vector.shape_cast %241 : vector<1x1x8x128xf32> to vector<8x128xf32>
    %243 = vector.shape_cast %240 : vector<8x128xf32> to vector<1x1x8x128xf32>
    tpu.vector_store %arg4[%c0_197, %c9_198, %c0_199, %c0_200], %243 {strides = array<i32>} : memref<1x10x8x128xf32, #tpu.memory_space<vmem>>, vector<1x1x8x128xf32>,
    %c0_201 = arith.constant 0 : index
    %c9_202 = arith.constant 9 : index
    %c0_203 = arith.constant 0 : index
    %c0_204 = arith.constant 0 : index
    %244 = vector.load %arg5[%c0_201, %c9_202, %c0_203, %c0_204] : memref<1x10x8x128xf32, #tpu.memory_space<vmem>>, vector<1x1x8x128xf32>
    %245 = vector.shape_cast %244 : vector<1x1x8x128xf32> to vector<8x128xf32>
    %246 = arith.addf %245, %129 : vector<8x128xf32>
    %c0_205 = arith.constant 0 : index
    %c9_206 = arith.constant 9 : index
    %c0_207 = arith.constant 0 : index
    %c0_208 = arith.constant 0 : index
    %247 = vector.load %arg5[%c0_205, %c9_206, %c0_207, %c0_208] : memref<1x10x8x128xf32, #tpu.memory_space<vmem>>, vector<1x1x8x128xf32>
    %248 = vector.shape_cast %247 : vector<1x1x8x128xf32> to vector<8x128xf32>
    %249 = vector.shape_cast %246 : vector<8x128xf32> to vector<1x1x8x128xf32>
    tpu.vector_store %arg5[%c0_205, %c9_206, %c0_207, %c0_208], %249 {strides = array<i32>} : memref<1x10x8x128xf32, #tpu.memory_space<vmem>>, vector<1x1x8x128xf32>,
    return
  }
  func.func @transform_0(%arg0: i32, %arg1: i32) -> (i32, i32) {
    %c1_i32 = arith.constant 1 : i32
    %0 = arith.muli %arg0, %c1_i32 : i32
    %1 = arith.addi %0, %arg1 : i32
    %c0_i32 = arith.constant 0 : i32
    %c0_i32_0 = arith.constant 0 : i32
    return %1, %c0_i32 : i32, i32
  }
  func.func @transform_1(%arg0: i32, %arg1: i32) -> (i32, i32) {
    %c1_i32 = arith.constant 1 : i32
    %0 = arith.muli %arg0, %c1_i32 : i32
    %1 = arith.addi %0, %arg1 : i32
    %c0_i32 = arith.constant 0 : i32
    %c0_i32_0 = arith.constant 0 : i32
    return %1, %c0_i32 : i32, i32
  }
  func.func @transform_2(%arg0: i32, %arg1: i32) -> (i32, i32, i32, i32) {
    %c0_i32 = arith.constant 0 : i32
    %c0_i32_0 = arith.constant 0 : i32
    %c0_i32_1 = arith.constant 0 : i32
    %c0_i32_2 = arith.constant 0 : i32
    return %arg0, %c0_i32, %c0_i32_0, %c0_i32_1 : i32, i32, i32, i32
  }
  func.func @transform_3(%arg0: i32, %arg1: i32) -> (i32, i32, i32, i32) {
    %c0_i32 = arith.constant 0 : i32
    %c0_i32_0 = arith.constant 0 : i32
    %c0_i32_1 = arith.constant 0 : i32
    %c0_i32_2 = arith.constant 0 : i32
    return %arg0, %c0_i32, %c0_i32_0, %c0_i32_1 : i32, i32, i32, i32
  }
}

</mosaic_0001>

<bundles_post_ra>
// kernel: ghm_loss.1
= control target key start
LH: loop header
LB: loop body
LE: loop exit
PB: predicated region body
PF: predicated region fallthrough
CT: control target
= control target key end

     0   :  { %s641_s12 = smov 0   ;;  %s643_s13 = smov 0   ;;  %s720_s0 = inlined_call_operand.vmem [shape: f32[16,128], index: 0, kind: input, shape index: {}]   ;;  %s721_s1 = inlined_call_operand.vmem [shape: f32[16,128], index: 1, kind: input, shape index: {}]   ;;  %s722_s2 = inlined_call_operand.vmem [shape: f32[2,10,8,128], index: 2, kind: output, shape index: {0}]   ;;  %s723_s3 = inlined_call_operand.vmem [shape: f32[2,10,8,128], index: 3, kind: output, shape index: {1}]  }
   0x1   :  { %s645_s14 = smov 0  }
   0x2 LB: > { %s26_s15 = sadd.s32 1, %s614_s13  ;;  %p521_p0 = scmp.ge.s32.totalorder %s618_s14, 1  ;;  %s618_s14 = sphi %s645_s14, %s14_s14   ;;  %s614_s13 = sphi %s643_s13, %s725_s13   ;;  %s610_s12 = sphi %s641_s12, %s724_s12  }
   0x3   : > { %p28_p1 = scmp.ge.s32.totalorder %s26_s15, 2  ;;  %p168_p2 = scmp.lt.s32.totalorder %s618_s14, 3 }
   0x5   : > { %s727_s15 = smov (%p28_p1, %s26_s15), 0  ;;  %p169_p3 = pnand %p521_p0, %p168_p2 }
   0x6   : > { %p203_p4 = scmp.lt.s32.totalorder (!%p169_p3), %s610_s12, 1 }
   0x7   : > { %172 = sbr.rel (%p169_p3) target bundleno = 76 (0x4c), region = 28 }
   0xc   : > { %s729_s12 = smov (!%p203_p4, %s610_s12), 1  ;;  %v620_v25 = vmov 0.0  }
   0xd   : > { %s522_s16 = sshll.u32 %s729_s12, 3  ;;  %s564_s23 = smul.u32 80, %s729_s12 }
   0xe   : > { %s206_s19 = scalar_lea.vmem %s720_s0, %s522_s16  ;;  %s212_s22 = scalar_lea.vmem %s721_s1, %s522_s16 }
   0xf   : > { %v248_v0 = vld [vmem:[%s206_s19] sm:$0xff]  ;;  %s672_s26 = scalar_lea.vmem %s722_s2, %s564_s23  ;;  %s686_s29 = scalar_lea.vmem %s723_s3, %s564_s23 }
  0x10   : > { %v250_v1 = vsub.f32 0.0, %v248_v0  ;;  %v249_v13 = vld [vmem:[%s212_s22] sm:$0xff]  ;;  %v273_v20 = vmax.f32 %v248_v0, 0.0 }
  0x11   : > { %v274_v21 = vmul.f32 %v249_v13, %v248_v0 }
  0x12   : > { %v251_v2 = vmul.f32 1.442695, %v250_v1 }
  0x13   : > { %v275_v24 = vsub.f32 %v273_v20, %v274_v21 }
  0x14   : > { %590 = vpow2.f32 %v251_v2 }
  0x1a   : > { %v591_v3 = vpop.eup %590 }
  0x1b   : > { %v253_v4 = vadd.f32 1.0, %v591_v3 }
  0x1d   : > { %592 = vrcp.f32 %v253_v4  ;;  %v265_v7 = vand.u32 2147483648, %v253_v4  ;;  %vm259_vm0 = vweird.f32 %v253_v4  ;;  %v263_v9 = vand.u32 2147483647, %v253_v4 }
  0x1f   : > { %v266_v11 = vor.u32 1.1754944e-38, %v265_v7  ;;  %vm264_vm3 = vcmp.eq.f32.partialorder %v263_v9, 8.507059e+37 }
  0x23   : > { %v593_v5 = vpop.eup %592 }
  0x24   : > { %v255_v6 = vmul.f32 %v593_v5, %v253_v4  ;;  %vm260_vm1 = vweird.f32 %v593_v5 }
  0x25   : > { %vm261_vm2 = vmor %vm259_vm0, %vm260_vm1 }
  0x26   : > { %v256_v8 = vsub.f32 1.0, %v255_v6 }
  0x28   : > { %v257_v10 = vmul.f32 %v593_v5, %v256_v8 }
  0x2a   : > { %v258_v12 = vadd.f32 %v593_v5, %v257_v10 }
  0x2c   : > { %v262_v14 = vsel %vm261_vm2, %v593_v5, %v258_v12 }
  0x2d   : > { %v267_v15 = vsel %vm264_vm3, %v266_v11, %v262_v14 }
  0x2e   : > { %v269_v16 = vsub.f32 %v267_v15, %v249_v13  ;;  %v276_v17 = vsub.f32 1.0, %v267_v15 }
  0x30   : > { %v270_v18 = vand.u32 2147483647, %v269_v16  ;;  %v277_v19 = vmax.f32 %v267_v15, %v276_v17 }
  0x32   : > { %v271_v22 = vmul.f32 9.9999, %v270_v18  ;;  %594 = vlog2.f32 %v277_v19 }
  0x34   : > { %v272_v23 = vfloor.f32 %v271_v22 }
  0x36   : > { %vm281_vm4 = vcmp.eq.f32.partialorder %v272_v23, 0.0  ;;  %vm286_vm5 = vcmp.eq.f32.partialorder %v272_v23, 1.0  ;;  %vm291_vm6 = vcmp.eq.f32.partialorder %v272_v23, 2.0  ;;  %vm296_vm7 = vcmp.eq.f32.partialorder %v272_v23, 3.0 }
  0x37   : > { %v282_v26 = vsel %vm281_vm4, 1.0, %v620_v25  ;;  %v287_v27 = vsel %vm286_vm5, 1.0, %v620_v25  ;;  %v292_v28 = vsel %vm291_vm6, 1.0, %v620_v25  ;;  %v297_v29 = vsel %vm296_vm7, 1.0, %v620_v25 }
  0x38   : > { %v595_v30 = vpop.eup %594  ;;  %vm301_vm8 = vcmp.eq.f32.partialorder %v272_v23, 4.0  ;;  %vm306_vm9 = vcmp.eq.f32.partialorder %v272_v23, 5.0  ;;  %333 = vst [vmem:[%s672_s26] sm:$0xff] %v282_v26  ;;  %vm311_vm10 = vcmp.eq.f32.partialorder %v272_v23, 6.0  ;;  %vm316_vm11 = vcmp.eq.f32.partialorder %v272_v23, 7.0 }
  0x39   : > { %v279_v31 = vmul.f32 0.6931472, %v595_v30  ;;  %v302_v32 = vsel %vm301_vm8, 1.0, %v620_v25  ;;  %v307_v33 = vsel %vm306_vm9, 1.0, %v620_v25  ;;  %527 = vst [vmem:[%s672_s26 + $0x8] sm:$0xff] %v287_v27  ;;  %v312_v41 = vsel %vm311_vm10, 1.0, %v620_v25 }
  0x3a   : > { %531 = vst [vmem:[%s672_s26 + $0x10] sm:$0xff] %v292_v28  ;;  %vm321_vm12 = vcmp.eq.f32.partialorder %v272_v23, 8.0  ;;  %v317_v43 = vsel %vm316_vm11, 1.0, %v620_v25  ;;  %vm326_vm13 = vcmp.eq.f32.partialorder %v272_v23, 9.0 }
  0x3b   : > { %v280_v34 = vsub.f32 %v275_v24, %v279_v31  ;;  %535 = vst [vmem:[%s672_s26 + $0x18] sm:$0xff] %v297_v29  ;;  %v322_v45 = vsel %vm321_vm12, 1.0, %v620_v25  ;;  %v327_v47 = vsel %vm326_vm13, 1.0, %v620_v25 }
  0x3c   : > { %539 = vst [vmem:[%s672_s26 + $0x20] sm:$0xff] %v302_v32 }
  0x3d   : > { %v284_v35 = vsel %vm281_vm4, %v280_v34, 0.0  ;;  %v289_v36 = vsel %vm286_vm5, %v280_v34, 0.0  ;;  %v294_v37 = vsel %vm291_vm6, %v280_v34, 0.0  ;;  %v299_v38 = vsel %vm296_vm7, %v280_v34, 0.0  ;;  %543 = vst [vmem:[%s672_s26 + $0x28] sm:$0xff] %v307_v33 }
  0x3e   : > { %v304_v39 = vsel %vm301_vm8, %v280_v34, 0.0  ;;  %v309_v40 = vsel %vm306_vm9, %v280_v34, 0.0  ;;  %336 = vst [vmem:[%s686_s29] sm:$0xff] %v284_v35  ;;  %v314_v42 = vsel %vm311_vm10, %v280_v34, 0.0  ;;  %v319_v44 = vsel %vm316_vm11, %v280_v34, 0.0 }
  0x3f   : > { %529 = vst [vmem:[%s686_s29 + $0x8] sm:$0xff] %v289_v36  ;;  %v324_v46 = vsel %vm321_vm12, %v280_v34, 0.0  ;;  %v329_v48 = vsel %vm326_vm13, %v280_v34, 0.0 }
  0x40   : > { %533 = vst [vmem:[%s686_s29 + $0x10] sm:$0xff] %v294_v37 }
  0x41   : > { %537 = vst [vmem:[%s686_s29 + $0x18] sm:$0xff] %v299_v38 }
  0x42   : > { %541 = vst [vmem:[%s686_s29 + $0x20] sm:$0xff] %v304_v39 }
  0x43   : > { %545 = vst [vmem:[%s686_s29 + $0x28] sm:$0xff] %v309_v40 }
  0x44   : > { %547 = vst [vmem:[%s672_s26 + $0x30] sm:$0xff] %v312_v41 }
  0x45   : > { %549 = vst [vmem:[%s686_s29 + $0x30] sm:$0xff] %v314_v42 }
  0x46   : > { %551 = vst [vmem:[%s672_s26 + $0x38] sm:$0xff] %v317_v43 }
  0x47   : > { %553 = vst [vmem:[%s686_s29 + $0x38] sm:$0xff] %v319_v44 }
  0x48   : > { %555 = vst [vmem:[%s672_s26 + $0x40] sm:$0xff] %v322_v45 }
  0x49   : > { %557 = vst [vmem:[%s686_s29 + $0x40] sm:$0xff] %v324_v46 }
  0x4a   : > { %559 = vst [vmem:[%s672_s26 + $0x48] sm:$0xff] %v327_v47 }
  0x4b   : > { %561 = vst [vmem:[%s686_s29 + $0x48] sm:$0xff] %v329_v48 }
  0x4c PF: > { %s14_s14 = sadd.s32 1, %s618_s14   ;;  %s724_s12 = smov %s614_s13 }
  0x4d   : > { %p11_p5 = scmp.ge.s32.totalorder %s14_s14, 4   ;;  %s725_s13 = smov %s727_s15 }
  0x4f   :  { %13 = sbr.rel (!%p11_p5) target bundleno = 2 (0x2), region = 95 }

</bundles_post_ra>
